<compile_context>
chip_gen: v7x
topology: tpu7x:2x2x1
jax: 0.10.0
libtpu: 0.0.40
codegen_flags: <defaults>
</compile_context>

<pallas_src>
import functools

import jax
import jax.numpy as jnp
from jax.experimental import pallas as pl
from jax.experimental.pallas import tpu as pltpu

_LANES = 128
_TILE_ROWS = 4096          # 4096 x 128 x 4B = 2 MiB per f32 input block
_SMOOTH = 1e-5


def _tversky_sums_kernel(p_ref, t_ref, out_ref, acc_pt_ref, acc_p_ref,
                         acc_t_ref, *, needs_mask, valid_rows_last):
    """Accumulates sum(sigmoid(p)*t), sum(sigmoid(p)), sum(t) over the grid."""
    i = pl.program_id(0)
    nsteps = pl.num_programs(0)
    tile_rows = p_ref.shape[0]
    acc_rows = acc_pt_ref.shape[0]

    @pl.when(i == 0)
    def _init():
        acc_pt_ref[...] = jnp.zeros_like(acc_pt_ref)
        acc_p_ref[...] = jnp.zeros_like(acc_p_ref)
        acc_t_ref[...] = jnp.zeros_like(acc_t_ref)

    # Native-dtype stream, f32 cast on the VPU; sigmoid via EUP tanh
    # (sigmoid(x) == 0.5 * (tanh(x/2) + 1), exact).
    x = p_ref[...].astype(jnp.float32)
    p = 0.5 * (jnp.tanh(0.5 * x) + 1.0)
    t = t_ref[...].astype(jnp.float32)

    def _partial(v):
        # Fold (tile_rows, 128) -> (acc_rows, 128) with VALU vreg adds only.
        if tile_rows == acc_rows:
            return v
        if acc_rows == 8:
            return jnp.sum(v.reshape(tile_rows // 8, 8, _LANES), axis=0)
        return jnp.sum(v, axis=0, keepdims=True)

    def _accumulate(p_v, t_v):
        acc_pt_ref[...] += _partial(p_v * t_v)
        acc_p_ref[...] += _partial(p_v)
        acc_t_ref[...] += _partial(t_v)

    if needs_mask:
        # Only the final grid step can hold out-of-range rows; mask on the
        # sublane (row) index alone, all other steps take the unmasked path.
        @pl.when(i < nsteps - 1)
        def _steady():
            _accumulate(p, t)

        @pl.when(i == nsteps - 1)
        def _masked_tail():
            row = jax.lax.broadcasted_iota(jnp.int32, (tile_rows, _LANES), 0)
            valid = row < valid_rows_last
            _accumulate(jnp.where(valid, p, 0.0), jnp.where(valid, t, 0.0))
    else:
        _accumulate(p, t)

    @pl.when(i == nsteps - 1)
    def _finalize():
        out_ref[0] = jnp.sum(acc_pt_ref[...])   # sum(p * t)  (true positives)
        out_ref[1] = jnp.sum(acc_p_ref[...])    # sum(p)
        out_ref[2] = jnp.sum(acc_t_ref[...])    # sum(t)


def _partial_sums_pallas(p2, t2, full_rows, tile_rows):
    num_tiles = pl.cdiv(full_rows, tile_rows)
    valid_rows_last = full_rows - (num_tiles - 1) * tile_rows
    needs_mask = valid_rows_last != tile_rows
    acc_rows = 8 if tile_rows % 8 == 0 else 1

    kernel = functools.partial(
        _tversky_sums_kernel,
        needs_mask=needs_mask,
        valid_rows_last=valid_rows_last,
    )
    return pl.pallas_call(
        kernel,
        out_shape=jax.ShapeDtypeStruct((3,), jnp.float32),
        grid_spec=pltpu.PrefetchScalarGridSpec(
            num_scalar_prefetch=0,
            grid=(num_tiles,),
            in_specs=[
                pl.BlockSpec((tile_rows, _LANES), lambda i: (i, 0)),
                pl.BlockSpec((tile_rows, _LANES), lambda i: (i, 0)),
            ],
            out_specs=pl.BlockSpec(memory_space=pltpu.SMEM),
            scratch_shapes=[
                pltpu.VMEM((acc_rows, _LANES), jnp.float32),   # sum(p*t)
                pltpu.VMEM((acc_rows, _LANES), jnp.float32),   # sum(p)
                pltpu.VMEM((acc_rows, _LANES), jnp.float32),   # sum(t)
            ],
        ),
        compiler_params=pltpu.CompilerParams(
            dimension_semantics=("arbitrary",),   # sequential reduction axis
        ),
    )(p2, t2)


def binary_tversky_loss(preds, targets, *, delta=0.7, gamma=3,
                        size_average=True, tile_rows_hint=_TILE_ROWS):
    """Matches BinaryTverskyLoss(delta, gamma, size_average).forward.

    preds, targets: same-shape NCHW arrays (any float/int dtype).
    Returns a (1,) float32 array (size_average=True) or a scalar otherwise.
    """
    # TODO(synk): gamma is unused in the reference forward (focal exponent is
    # never applied there), so it is dropped here as well.
    del gamma
    assert preds.shape == targets.shape
    total = int(preds.size)

    p_flat = preds.reshape(-1)
    t_flat = targets.reshape(-1)

    full_rows = total // _LANES
    tail = total - full_rows * _LANES   # < 128 leftover elements

    if full_rows > 0:
        if tail:
            p2 = p_flat[:full_rows * _LANES].reshape(full_rows, _LANES)
            t2 = t_flat[:full_rows * _LANES].reshape(full_rows, _LANES)
        else:
            p2 = p_flat.reshape(full_rows, _LANES)   # free metadata reshape
            t2 = t_flat.reshape(full_rows, _LANES)
        tile_rows = min(int(tile_rows_hint), full_rows)
        sums = _partial_sums_pallas(p2, t2, full_rows, tile_rows)
        tp, sum_p, sum_t = sums[0], sums[1], sums[2]
    else:
        tp = jnp.float32(0.0)
        sum_p = jnp.float32(0.0)
        sum_t = jnp.float32(0.0)

    if tail:
        # <=127-element lane tail: tiny wrapper-side correction, no pad copy.
        p_tail = jax.nn.sigmoid(p_flat[full_rows * _LANES:].astype(jnp.float32))
        t_tail = t_flat[full_rows * _LANES:].astype(jnp.float32)
        tp = tp + jnp.sum(p_tail * t_tail)
        sum_p = sum_p + jnp.sum(p_tail)
        sum_t = sum_t + jnp.sum(t_tail)

    fp = sum_p - tp                      # sum(p * (1 - t))
    fn = sum_t - tp                      # sum((1 - p) * t)
    den = tp + delta * fp + (1.0 - delta) * fn
    ti = tp / (den + _SMOOTH)
    loss = (1.0 - ti).astype(jnp.float32)

    if size_average:
        # TI has a single element, so TI.mean() == TI; loss has TI's shape (1,).
        return jnp.reshape(loss, (1,))
    return loss                           # scalar: 1.0 - TI.sum()


def _reference(preds, targets, delta=0.7):
    p = jax.nn.sigmoid(preds.astype(jnp.float32)).reshape(-1)
    t = targets.astype(jnp.float32).reshape(-1)
    tp = jnp.sum(p * t)
    fp = jnp.sum(p * (1.0 - t))
    fn = jnp.sum((1.0 - p) * t)
    ti = tp / (tp + delta * fp + (1.0 - delta) * fn + _SMOOTH)
    return jnp.array([1.0 - ti], dtype=jnp.float32)


if __name__ == "__main__":
    key = jax.random.PRNGKey(0)
    k1, k2, k3, k4, k5, k6 = jax.random.split(key, 6)

    # 1) NCHW, total % 128 == 0: steady-state single-tile path.
    preds = jax.random.normal(k1, (2, 4, 16, 16), dtype=jnp.float32)
    targets = (jax.random.uniform(k2, (2, 4, 16, 16)) > 0.5).astype(jnp.float32)
    loss = jax.block_until_ready(
        binary_tversky_loss(preds, targets, delta=0.7, size_average=True))
    ref = _reference(preds, targets, delta=0.7)
    assert loss.shape == (1,)
    assert jnp.allclose(loss, ref, atol=1e-5, rtol=1e-5), (loss, ref)

    # 2) Ragged lane tail (total % 128 != 0): wrapper-side tail correction.
    preds2 = jax.random.normal(k3, (2, 3, 5, 7), dtype=jnp.float32)
    targets2 = (jax.random.uniform(k4, (2, 3, 5, 7)) > 0.5).astype(jnp.float32)
    loss2 = jax.block_until_ready(
        binary_tversky_loss(preds2, targets2, delta=0.7, size_average=True))
    ref2 = _reference(preds2, targets2, delta=0.7)
    assert jnp.allclose(loss2, ref2, atol=1e-5, rtol=1e-5), (loss2, ref2)

    # 3) Multi-tile grid with a row-ragged final tile (small tile hint forces
    #    20 rows / 8-row tiles -> 3 steps, 4 valid rows in the last one).
    preds3 = jax.random.normal(k5, (2, 4, 16, 20), dtype=jnp.float32)
    targets3 = (jax.random.uniform(k6, (2, 4, 16, 20)) > 0.5).astype(jnp.float32)
    loss3 = jax.block_until_ready(
        binary_tversky_loss(preds3, targets3, delta=0.7, size_average=True,
                            tile_rows_hint=8))
    ref3 = _reference(preds3, targets3, delta=0.7)
    assert jnp.allclose(loss3, ref3, atol=1e-5, rtol=1e-5), (loss3, ref3)

    print("KERNEL_OK")
</pallas_src>

<mosaic_0001>
module attributes {stable_mosaic.version = 11 : i64} {
  func.func @_tversky_sums_kernel(%arg0: i32, %arg1: memref<16x128xf32, #tpu.memory_space<vmem>>, %arg2: memref<16x128xf32, #tpu.memory_space<vmem>>, %arg3: memref<3xf32, #tpu.memory_space<smem>>, %arg4: memref<8x128xf32, #tpu.memory_space<vmem>>, %arg5: memref<8x128xf32, #tpu.memory_space<vmem>>, %arg6: memref<8x128xf32, #tpu.memory_space<vmem>>) attributes {dimension_semantics = [#tpu.dimension_semantics<arbitrary>], iteration_bounds = array<i64: 1>, scalar_prefetch = 0 : i64, scratch_operands = 3 : i64, tpu.core_type = #tpu.core_type<tc>, window_params = [{transform_indices = @transform_0, window_bounds = array<i64: 16, 128>}, {transform_indices = @transform_1, window_bounds = array<i64: 16, 128>}, {transform_indices = @transform_2, window_bounds = array<i64: 3>}]} {
    %c0_i32 = arith.constant 0 : i32
    %0 = arith.cmpi eq, %arg0, %c0_i32 : i32
    %1 = arith.extui %0 : i1 to i32
    %c0_i32_0 = arith.constant 0 : i32
    %2 = arith.cmpi ne, %1, %c0_i32_0 : i32
    scf.if %2 {
      %cst_23 = arith.constant 0.000000e+00 : f32
      %31 = vector.broadcast %cst_23 : f32 to vector<8x128xf32>
      %c0_24 = arith.constant 0 : index
      %c0_25 = arith.constant 0 : index
      %32 = vector.load %arg4[%c0_24, %c0_25] : memref<8x128xf32, #tpu.memory_space<vmem>>, vector<8x128xf32>
      tpu.vector_store %arg4[%c0_24, %c0_25], %31 {strides = array<i32>} : memref<8x128xf32, #tpu.memory_space<vmem>>, vector<8x128xf32>,
      %cst_26 = arith.constant 0.000000e+00 : f32
      %33 = vector.broadcast %cst_26 : f32 to vector<8x128xf32>
      %c0_27 = arith.constant 0 : index
      %c0_28 = arith.constant 0 : index
      %34 = vector.load %arg5[%c0_27, %c0_28] : memref<8x128xf32, #tpu.memory_space<vmem>>, vector<8x128xf32>
      tpu.vector_store %arg5[%c0_27, %c0_28], %33 {strides = array<i32>} : memref<8x128xf32, #tpu.memory_space<vmem>>, vector<8x128xf32>,
      %cst_29 = arith.constant 0.000000e+00 : f32
      %35 = vector.broadcast %cst_29 : f32 to vector<8x128xf32>
      %c0_30 = arith.constant 0 : index
      %c0_31 = arith.constant 0 : index
      %36 = vector.load %arg6[%c0_30, %c0_31] : memref<8x128xf32, #tpu.memory_space<vmem>>, vector<8x128xf32>
      tpu.vector_store %arg6[%c0_30, %c0_31], %35 {strides = array<i32>} : memref<8x128xf32, #tpu.memory_space<vmem>>, vector<8x128xf32>,
    } else {
    }
    %c0 = arith.constant 0 : index
    %c0_1 = arith.constant 0 : index
    %3 = vector.load %arg1[%c0, %c0_1] : memref<16x128xf32, #tpu.memory_space<vmem>>, vector<16x128xf32>
    %cst = arith.constant 5.000000e-01 : f32
    %4 = vector.broadcast %cst : f32 to vector<16x128xf32>
    %5 = arith.mulf %4, %3 : vector<16x128xf32>
    %6 = math.tanh %5 : vector<16x128xf32>
    %cst_2 = arith.constant 1.000000e+00 : f32
    %7 = vector.broadcast %cst_2 : f32 to vector<16x128xf32>
    %8 = arith.addf %6, %7 : vector<16x128xf32>
    %cst_3 = arith.constant 5.000000e-01 : f32
    %9 = vector.broadcast %cst_3 : f32 to vector<16x128xf32>
    %10 = arith.mulf %9, %8 : vector<16x128xf32>
    %c0_4 = arith.constant 0 : index
    %c0_5 = arith.constant 0 : index
    %11 = vector.load %arg2[%c0_4, %c0_5] : memref<16x128xf32, #tpu.memory_space<vmem>>, vector<16x128xf32>
    %c0_6 = arith.constant 0 : index
    %c0_7 = arith.constant 0 : index
    %12 = vector.load %arg4[%c0_6, %c0_7] : memref<8x128xf32, #tpu.memory_space<vmem>>, vector<8x128xf32>
    %13 = arith.mulf %10, %11 : vector<16x128xf32>
    %14 = vector.shape_cast %13 : vector<16x128xf32> to vector<2x8x128xf32>
    %cst_8 = arith.constant dense<0.000000e+00> : vector<8x128xf32>
    %15 = vector.multi_reduction <add>, %14, %cst_8 [0] : vector<2x8x128xf32> to vector<8x128xf32>
    %16 = arith.addf %12, %15 : vector<8x128xf32>
    %c0_9 = arith.constant 0 : index
    %c0_10 = arith.constant 0 : index
    %17 = vector.load %arg4[%c0_9, %c0_10] : memref<8x128xf32, #tpu.memory_space<vmem>>, vector<8x128xf32>
    tpu.vector_store %arg4[%c0_9, %c0_10], %16 {strides = array<i32>} : memref<8x128xf32, #tpu.memory_space<vmem>>, vector<8x128xf32>,
    %c0_11 = arith.constant 0 : index
    %c0_12 = arith.constant 0 : index
    %18 = vector.load %arg5[%c0_11, %c0_12] : memref<8x128xf32, #tpu.memory_space<vmem>>, vector<8x128xf32>
    %19 = vector.shape_cast %10 : vector<16x128xf32> to vector<2x8x128xf32>
    %cst_13 = arith.constant dense<0.000000e+00> : vector<8x128xf32>
    %20 = vector.multi_reduction <add>, %19, %cst_13 [0] : vector<2x8x128xf32> to vector<8x128xf32>
    %21 = arith.addf %18, %20 : vector<8x128xf32>
    %c0_14 = arith.constant 0 : index
    %c0_15 = arith.constant 0 : index
    %22 = vector.load %arg5[%c0_14, %c0_15] : memref<8x128xf32, #tpu.memory_space<vmem>>, vector<8x128xf32>
    tpu.vector_store %arg5[%c0_14, %c0_15], %21 {strides = array<i32>} : memref<8x128xf32, #tpu.memory_space<vmem>>, vector<8x128xf32>,
    %c0_16 = arith.constant 0 : index
    %c0_17 = arith.constant 0 : index
    %23 = vector.load %arg6[%c0_16, %c0_17] : memref<8x128xf32, #tpu.memory_space<vmem>>, vector<8x128xf32>
    %24 = vector.shape_cast %11 : vector<16x128xf32> to vector<2x8x128xf32>
    %cst_18 = arith.constant dense<0.000000e+00> : vector<8x128xf32>
    %25 = vector.multi_reduction <add>, %24, %cst_18 [0] : vector<2x8x128xf32> to vector<8x128xf32>
    %26 = arith.addf %23, %25 : vector<8x128xf32>
    %c0_19 = arith.constant 0 : index
    %c0_20 = arith.constant 0 : index
    %27 = vector.load %arg6[%c0_19, %c0_20] : memref<8x128xf32, #tpu.memory_space<vmem>>, vector<8x128xf32>
    tpu.vector_store %arg6[%c0_19, %c0_20], %26 {strides = array<i32>} : memref<8x128xf32, #tpu.memory_space<vmem>>, vector<8x128xf32>,
    %c0_i32_21 = arith.constant 0 : i32
    %28 = arith.cmpi eq, %arg0, %c0_i32_21 : i32
    %29 = arith.extui %28 : i1 to i32
    %c0_i32_22 = arith.constant 0 : i32
    %30 = arith.cmpi ne, %29, %c0_i32_22 : i32
    scf.if %30 {
      %c0_23 = arith.constant 0 : index
      %c0_24 = arith.constant 0 : index
      %31 = vector.load %arg4[%c0_23, %c0_24] : memref<8x128xf32, #tpu.memory_space<vmem>>, vector<8x128xf32>
      %32 = vector.shape_cast %31 : vector<8x128xf32> to vector<1x8x128xf32>
      %cst_25 = arith.constant dense<0.000000e+00> : vector<1xf32>
      %33 = vector.multi_reduction <add>, %32, %cst_25 [1, 2] : vector<1x8x128xf32> to vector<1xf32>
      %34 = vector.shape_cast %33 : vector<1xf32> to vector<1x1x1xf32>
      %35 = vector.extract %34[0, 0, 0] : f32 from vector<1x1x1xf32>
      %c0_26 = arith.constant 0 : index
      %36 = memref.load %arg3[%c0_26] : memref<3xf32, #tpu.memory_space<smem>>
      memref.store %35, %arg3[%c0_26] : memref<3xf32, #tpu.memory_space<smem>>
      %c0_27 = arith.constant 0 : index
      %c0_28 = arith.constant 0 : index
      %37 = vector.load %arg5[%c0_27, %c0_28] : memref<8x128xf32, #tpu.memory_space<vmem>>, vector<8x128xf32>
      %38 = vector.shape_cast %37 : vector<8x128xf32> to vector<1x8x128xf32>
      %cst_29 = arith.constant dense<0.000000e+00> : vector<1xf32>
      %39 = vector.multi_reduction <add>, %38, %cst_29 [1, 2] : vector<1x8x128xf32> to vector<1xf32>
      %40 = vector.shape_cast %39 : vector<1xf32> to vector<1x1x1xf32>
      %41 = vector.extract %40[0, 0, 0] : f32 from vector<1x1x1xf32>
      %c1 = arith.constant 1 : index
      %42 = memref.load %arg3[%c1] : memref<3xf32, #tpu.memory_space<smem>>
      memref.store %41, %arg3[%c1] : memref<3xf32, #tpu.memory_space<smem>>
      %c0_30 = arith.constant 0 : index
      %c0_31 = arith.constant 0 : index
      %43 = vector.load %arg6[%c0_30, %c0_31] : memref<8x128xf32, #tpu.memory_space<vmem>>, vector<8x128xf32>
      %44 = vector.shape_cast %43 : vector<8x128xf32> to vector<1x8x128xf32>
      %cst_32 = arith.constant dense<0.000000e+00> : vector<1xf32>
      %45 = vector.multi_reduction <add>, %44, %cst_32 [1, 2] : vector<1x8x128xf32> to vector<1xf32>
      %46 = vector.shape_cast %45 : vector<1xf32> to vector<1x1x1xf32>
      %47 = vector.extract %46[0, 0, 0] : f32 from vector<1x1x1xf32>
      %c2 = arith.constant 2 : index
      %48 = memref.load %arg3[%c2] : memref<3xf32, #tpu.memory_space<smem>>
      memref.store %47, %arg3[%c2] : memref<3xf32, #tpu.memory_space<smem>>
    } else {
    }
    return
  }
  func.func @transform_0(%arg0: i32) -> (i32, i32) {
    %c0_i32 = arith.constant 0 : i32
    %c0_i32_0 = arith.constant 0 : i32
    return %arg0, %c0_i32 : i32, i32
  }
  func.func @transform_1(%arg0: i32) -> (i32, i32) {
    %c0_i32 = arith.constant 0 : i32
    %c0_i32_0 = arith.constant 0 : i32
    return %arg0, %c0_i32 : i32, i32
  }
  func.func @transform_2(%arg0: i32) -> i32 {
    %c0_i32 = arith.constant 0 : i32
    %c0_i32_0 = arith.constant 0 : i32
    return %c0_i32 : i32
  }
}

</mosaic_0001>

<bundles_post_ra>
// kernel: tpu_custom_call.1
= control target key start
LH: loop header
LB: loop body
LE: loop exit
PB: predicated region body
PF: predicated region fallthrough
CT: control target
= control target key end

     0   :  { %7 = vsyncpa [#allocation6], 0  ;;  %s258_s0 = inlined_call_operand.hbm [shape: f32[16,128], index: 0, kind: input, shape index: {}]   ;;  %s259_s1 = inlined_call_operand.hbm [shape: f32[16,128], index: 1, kind: input, shape index: {}]   ;;  %s260_s2 = inlined_call_operand.hbm [shape: f32[3], index: 2, kind: output, shape index: {}]  }
   0x1   :  { %8 = vsyncpa [#allocation9], 0 }
   0x2   :  { %9 = vsyncpa [#allocation7], 0  ;;  %s202_s9 = smov [#allocation5]   ;;  %s142_s13 = scalar_lea.hbm %s258_s0, 256 }
   0x3   :  { %s15_s10 = sshll.u32 %s202_s9, 4  ;;  %p143_p0 = scmp.ne.s32.totalorder %s258_s0, %s142_s13  ;;  %s16_s10 = int_to_ptr.vmem [resolvable:$true] %s15_s10 }
   0x4   :  { %p146_p1 = scmp.lt.u32.totalorder %s142_s13, %s258_s0 }
   0x6   :  { %p148_p2 = pnand %p146_p1, %p143_p0 }
   0x8   :  { %151 = shalt.err (!%p148_p2)
}
   0x9   :  { %s152_s18 = scalar_lea.vmem %s16_s10, 256  ;;  %p157_p4 = scmp.lt.s32.totalorder %s16_s10, %s16_s10 }
   0xa   :  { %p153_p3 = scmp.ne.s32.totalorder %s16_s10, %s152_s18  ;;  %p158_p5 = scmp.lt.s32.totalorder %s152_s18, %s152_s18 }
   0xc   :  { %p159_p6 = por %p158_p5, %p157_p4 }
   0xe   :  { %p160_p7 = pnand %p159_p6, %p153_p3 }
  0x10   :  { %163 = shalt.err (!%p160_p7)
}
  0x11   :  { %s203_s19 = smov 128   ;;  %s204_s20 = smov 8  }
  0x12   :  { %21 = dma.hbm_to_vmem [thread:$0]  %s258_s0, 256, %s16_s10, [#allocation6], %s203_s19, %s203_s19, %s204_s20  }
  0x13   :  { %s205_s23 = smov [#allocation8]   ;;  %s164_s27 = scalar_lea.hbm %s259_s1, 256 }
  0x14   :  { %s27_s24 = sshll.u32 %s205_s23, 4  ;;  %p165_p8 = scmp.ne.s32.totalorder %s259_s1, %s164_s27  ;;  %s28_s24 = int_to_ptr.vmem [resolvable:$true] %s27_s24 }
  0x15   :  { %p168_p9 = scmp.lt.u32.totalorder %s164_s27, %s259_s1 }
  0x17   :  { %p170_p10 = pnand %p168_p9, %p165_p8 }
  0x19   :  { %173 = shalt.err (!%p170_p10)
}
  0x1a   :  { %s174_s4 = scalar_lea.vmem %s28_s24, 256  ;;  %p179_p12 = scmp.lt.s32.totalorder %s28_s24, %s28_s24 }
  0x1b   :  { %p175_p11 = scmp.ne.s32.totalorder %s28_s24, %s174_s4  ;;  %p180_p13 = scmp.lt.s32.totalorder %s174_s4, %s174_s4 }
  0x1d   :  { %p181_p0 = por %p180_p13, %p179_p12 }
  0x1f   :  { %p182_p1 = pnand %p181_p0, %p175_p11 }
  0x21   :  { %185 = shalt.err (!%p182_p1)
}
  0x22   :  { %33 = dma.hbm_to_vmem [thread:$0]  %s259_s1, 256, %s28_s24, [#allocation9], %s203_s19, %s203_s19, %s204_s20  }
  0x23   :  { %196 = dma.done.wait [#allocation6], 256  }
  0x24   :  { %197 = vsyncadd [#allocation6], 4294967040 }
  0x25   :  { %198 = dma.done.wait [#allocation9], 256  }
  0x26   :  { %199 = vsyncadd [#allocation9], 4294967040  ;;  %v57_v0 = vld [vmem:[#allocation8] sm:$0xff]  ;;  %v58_v1 = vld [vmem:[#allocation8 + $0x8] sm:$0xff]  ;;  %s186_s10 = scalar_lea.hbm %s260_s2, 16 }
  0x27   :  { %v47_v2 = vld [vmem:[#allocation5] sm:$0xff]  ;;  %v70_v3 = vadd.f32 %v58_v1, %v57_v0  ;;  %v48_v4 = vld [vmem:[#allocation5 + $0x8] sm:$0xff]  ;;  %p187_p2 = scmp.ne.s32.totalorder %s260_s2, %s186_s10  ;;  %p190_p3 = scmp.lt.u32.totalorder %s186_s10, %s260_s2 }
  0x28   :  { %v49_v5 = vmul.f32 0.5, %v47_v2  ;;  %v50_v6 = vmul.f32 0.5, %v48_v4 }
  0x29   :  { %101 = vadd.xlane.f32.xlu1 %v70_v3  ;;  %p192_p4 = pnand %p190_p3, %p187_p2 }
  0x2a   :  { %138 = vtanh.f32 %v49_v5 }
  0x2b   :  { %140 = vtanh.f32 %v50_v6 }
  0x34   :  { %v139_v7 = vpop.eup %138 }
  0x35   :  { %v141_v8 = vpop.eup %140  ;;  %v53_v9 = vadd.f32 1.0, %v139_v7 }
  0x36   :  { %v54_v10 = vadd.f32 1.0, %v141_v8 }
  0x37   :  { %v55_v11 = vmul.f32 0.5, %v53_v9 }
  0x38   :  { %v56_v12 = vmul.f32 0.5, %v54_v10 }
  0x39   :  { %v60_v13 = vmul.f32 %v57_v0, %v55_v11 }
  0x3a   :  { %v61_v14 = vmul.f32 %v58_v1, %v56_v12  ;;  %v66_v16 = vadd.f32 %v56_v12, %v55_v11 }
  0x3c   :  { %v62_v15 = vadd.f32 %v61_v14, %v60_v13 }
  0x3e   :  { %77 = vadd.xlane.f32.xlu0 %v62_v15 }
  0x42   :  { %89 = vadd.xlane.f32.xlu0 %v66_v16 }
  0xb6   :  { %v102_v17 = vpop.xlane.xlu1 %101 }
  0xb7   :  { %v103_v18 = vrot.slane %v102_v17, 4 }
  0xb9   :  { %v104_v19 = vadd.f32 %v103_v18, %v102_v17 }
  0xbb   :  { %v105_v23 = vrot.slane %v104_v19, 2 }
  0xbd   :  { %v106_v29 = vadd.f32 %v105_v23, %v104_v19 }
  0xbf   :  { %v107_v34 = vrot.slane %v106_v29, 1 }
  0xc1   :  { %v108_v37 = vadd.f32 %v107_v34, %v106_v29 }
  0xcb   :  { %v78_v20 = vpop.xlane.xlu0 %77 }
  0xcc   :  { %v79_v21 = vrot.slane %v78_v20, 4 }
  0xce   :  { %v80_v22 = vadd.f32 %v79_v21, %v78_v20 }
  0xcf   :  { %v90_v24 = vpop.xlane.xlu0 %89 }
  0xd0   :  { %v81_v25 = vrot.slane %v80_v22, 2  ;;  %v91_v26 = vrot.slane %v90_v24, 4 }
  0xd2   :  { %v92_v27 = vadd.f32 %v91_v26, %v90_v24  ;;  %v82_v28 = vadd.f32 %v81_v25, %v80_v22 }
  0xd4   :  { %v93_v30 = vrot.slane %v92_v27, 2  ;;  %v83_v31 = vrot.slane %v82_v28, 1 }
  0xd6   :  { %v94_v32 = vadd.f32 %v93_v30, %v92_v27  ;;  %v84_v33 = vadd.f32 %v83_v31, %v82_v28 }
  0xd8   :  { %127 = vpush %v84_v33  ;;  %v95_v35 = vrot.slane %v94_v32, 1 }
  0xda   :  { %v96_v36 = vadd.f32 %v95_v35, %v94_v32 }
  0xdc   :  { %129 = vpush %v96_v36 }
  0xdd   :  { %131 = vpush %v108_v37 }
 0x109   :  { %s128_s1 = spop %127 }
 0x10a   :  { %87 = sst [smem:[#allocation10]] %s128_s1 }
 0x10d   :  { %s130_s6 = spop %129 }
 0x10e   :  { %99 = sst [smem:[#allocation10 + $0x1]] %s130_s6  ;;  %s132_s7 = spop %131 }
 0x10f   :  { %111 = sst [smem:[#allocation10 + $0x2]] %s132_s7 }
 0x110   :  { %195 = shalt.err (!%p192_p4)
}
 0x111   :  { %s206_s15 = smov [#allocation10]  }
 0x112   :  { %119 = dma.smem_to_hbm %s206_s15, 16, %s260_s2, [#allocation7]  }
 0x113   :  { %200 = dma.done.wait [#allocation7], 16  }
 0x114   :  { %201 = vsyncadd [#allocation7], 4294967280 }
 0x115   :  { %123 = sfence }
 0x116   :  { %124 = vsyncpa [#allocation6], 1 }
 0x117   :  { %125 = vsyncpa [#allocation9], 1 }
 0x118   :  { %126 = vsyncpa [#allocation7], 1 }

</bundles_post_ra>
